<compile_context>
chip_gen: v7x
topology: tpu7x:2x2x1
jax: 0.10.0
libtpu: 0.0.40
codegen_flags: <defaults>
</compile_context>

<pallas_src>
import jax
import jax.numpy as jnp
from jax import lax
from jax.experimental import pallas as pl
from jax.experimental.pallas import tpu as pltpu


def gating_kernel(x_ref, w_ref, b_ref, ones_ref, o_ref):
    # x_ref:    (TB, P*D)   packed, lane-dense rows (P original rows per row)
    # w_ref:    (P*D, P*N)  block-diagonal weight (P copies of W^T on the diag)
    # b_ref:    (1, P*N)    bias tiled P times
    # ones_ref: (P*N, P*N)  block-diagonal ones (N x N blocks) for group sums
    # o_ref:    (TB, P*N)   packed softmax outputs
    logits = jnp.dot(x_ref[...], w_ref[...],
                     preferred_element_type=jnp.float32) + b_ref[...]
    # Row-wide max: it is constant within each packed group of N lanes, so the
    # group-wise softmax is mathematically unchanged (just a stabilizer).
    m = jnp.max(logits, axis=-1, keepdims=True)
    e = jnp.exp(logits - m)
    # Per-group-of-N sums, broadcast to every lane of the group, via a tiny
    # block-diagonal ones matmul.  HIGHEST precision so the denominator is
    # f32-exact and rows sum to 1 (strict normalization, documented choice).
    denom = jnp.dot(e, ones_ref[...],
                    preferred_element_type=jnp.float32,
                    precision=lax.Precision.HIGHEST)
    o_ref[...] = (e / denom).astype(o_ref.dtype)


def _pack_factor(input_dim):
    """How many batch rows to pack into the MXU contraction dim."""
    depth = 256                      # v6e / v7x MXU depth
    try:
        kind = jax.devices()[0].device_kind.lower()
        if "v5e" in kind or "v5 lite" in kind or "v5lite" in kind:
            depth = 128              # v5e MXU is 128 deep -> pack 4 (K = 128)
    except Exception:
        pass
    return max(1, min(8, depth // max(1, input_dim)))


def _choose_row_tile(rows, packed_width):
    """Pick the packed-row tile from a VMEM budget, not a fixed knee."""
    # Per packed row, double-buffered: x block (packed_width lanes, f32) +
    # out block (lane-padded to 128, f32).
    per_row = (packed_width * 4 + 128 * 4) * 2
    budget = 20 * 1024 * 1024        # fits v7x's 32 MiB scoped VMEM with headroom
    max_tb = max(8, min(4096, (budget // per_row) // 8 * 8))
    if rows <= 8:
        return rows                  # single full-extent block (always legal)
    if rows <= 2 * max_tb:
        # Split into >=2 tiles so ("parallel",) can use both TensorCores (v7x).
        return min(max_tb, max(8, ((rows + 1) // 2 + 7) // 8 * 8))
    return max_tb


def gating_network(x, weight, bias):
    """x: (B, D) f32; weight: (N, D) f32 (PyTorch nn.Linear layout); bias: (N,) f32."""
    B, D = x.shape
    N = weight.shape[0]
    P = _pack_factor(D)

    # Pad batch to a multiple of the packing factor; padded rows just compute
    # softmax(bias) and are sliced off below.
    Bp = ((B + P - 1) // P) * P
    if Bp != B:
        x = jnp.pad(x, ((0, Bp - B), (0, 0)))
    rows = Bp // P
    xp = x.reshape(rows, P * D)                       # free, contiguous reshape

    # Trace-time constants (tiny: a few tens of KB for D=32, N=4, P=8).
    eye_p = jnp.eye(P, dtype=weight.dtype)
    w_bd = jnp.einsum("pq,dn->pdqn", eye_p, weight.T).reshape(P * D, P * N)
    b_t = jnp.tile(bias, P).reshape(1, P * N)
    ones_bd = jnp.einsum("pq,mn->pmqn", eye_p,
                         jnp.ones((N, N), weight.dtype)).reshape(P * N, P * N)

    tb = _choose_row_tile(rows, P * D)
    grid = (pl.cdiv(rows, tb),)

    cost = pl.CostEstimate(
        flops=2 * rows * (P * D) * (P * N)            # block-diag matmul
              + 2 * rows * (P * N) * (P * N)          # denominator matmul
              + 6 * rows * (P * N),                   # softmax arithmetic
        transcendentals=rows * (P * N),               # exp
        bytes_accessed=4 * (rows * P * D + (P * D) * (P * N)
                            + (P * N) * (P * N) + P * N + rows * P * N),
    )

    out_p = pl.pallas_call(
        gating_kernel,
        out_shape=jax.ShapeDtypeStruct((rows, P * N), jnp.float32),
        grid_spec=pltpu.PrefetchScalarGridSpec(
            num_scalar_prefetch=0,
            grid=grid,
            in_specs=[
                pl.BlockSpec((tb, P * D), lambda i: (i, 0)),     # x: tiled over batch
                pl.BlockSpec((P * D, P * N), lambda i: (0, 0)),  # weight: VMEM-resident
                pl.BlockSpec((1, P * N), lambda i: (0, 0)),      # bias: VMEM-resident
                pl.BlockSpec((P * N, P * N), lambda i: (0, 0)),  # ones: VMEM-resident
            ],
            out_specs=pl.BlockSpec((tb, P * N), lambda i: (i, 0)),
        ),
        compiler_params=pltpu.CompilerParams(
            dimension_semantics=("parallel",),        # shard batch tiles across TCs
            vmem_limit_bytes=32 * 1024 * 1024,        # explicit, safe on v5e/v6e/v7x
        ),
        cost_estimate=cost,
    )(xp, w_bd, b_t, ones_bd)

    # Unpack: (rows, P*N) -> (Bp, N) is a free reshape; drop padded rows.
    return out_p.reshape(Bp, N)[:B]


def gating_network_ref(x, weight, bias):
    logits = x @ weight.T + bias
    return jax.nn.softmax(logits, axis=1)


def _check(key, batch, input_dim, num_students):
    kx, kw, kb = jax.random.split(key, 3)
    x = jax.random.normal(kx, (batch, input_dim), dtype=jnp.float32)
    bound = 1.0 / (input_dim ** 0.5)      # mimics nn.Linear uniform init
    weight = jax.random.uniform(kw, (num_students, input_dim),
                                minval=-bound, maxval=bound, dtype=jnp.float32)
    bias = jax.random.uniform(kb, (num_students,),
                              minval=-bound, maxval=bound, dtype=jnp.float32)

    out = jax.block_until_ready(gating_network(x, weight, bias))
    ref = gating_network_ref(x, weight, bias)

    assert out.shape == (batch, num_students)
    # Default MXU precision truncates f32 operands to bf16 on real hardware,
    # so allow a couple of e-3 vs. the XLA reference.
    assert jnp.allclose(out, ref, atol=2e-3, rtol=2e-3)
    # Exact division (+ exact denominator) -> rows sum to 1 to f32 rounding.
    assert jnp.allclose(jnp.sum(out, axis=1), 1.0, atol=1e-3)


if __name__ == "__main__":
    key = jax.random.PRNGKey(0)
    k1, k2 = jax.random.split(key)
    # Shapes consistent with the module's forward: x (batch, input_dim).
    _check(k1, batch=8, input_dim=32, num_students=4)
    # Non-multiple-of-pack batch: exercises the padding / unpack path.
    _check(k2, batch=20, input_dim=32, num_students=4)
    print("KERNEL_OK")
</pallas_src>

<mosaic_0001>
module attributes {stable_mosaic.version = 11 : i64} {
  func.func @gating_kernel(%arg0: i32, %arg1: memref<1x256xf32, #tpu.memory_space<vmem>>, %arg2: memref<256x32xf32, #tpu.memory_space<vmem>>, %arg3: memref<1x32xf32, #tpu.memory_space<vmem>>, %arg4: memref<32x32xf32, #tpu.memory_space<vmem>>, %arg5: memref<1x32xf32, #tpu.memory_space<vmem>>) attributes {dimension_semantics = [#tpu.dimension_semantics<parallel>], iteration_bounds = array<i64: 1>, scalar_prefetch = 0 : i64, scratch_operands = 0 : i64, tpu.core_type = #tpu.core_type<tc>, window_params = [{transform_indices = @transform_0, window_bounds = array<i64: 1, 256>}, {pipeline_mode = #tpu.pipeline_mode<synchronous>, transform_indices = @transform_1, window_bounds = array<i64: 256, 32>}, {pipeline_mode = #tpu.pipeline_mode<synchronous>, transform_indices = @transform_2, window_bounds = array<i64: 1, 32>}, {pipeline_mode = #tpu.pipeline_mode<synchronous>, transform_indices = @transform_3, window_bounds = array<i64: 32, 32>}, {transform_indices = @transform_4, window_bounds = array<i64: 1, 32>}]} {
    %c0 = arith.constant 0 : index
    %c0_0 = arith.constant 0 : index
    %0 = vector.load %arg1[%c0, %c0_0] : memref<1x256xf32, #tpu.memory_space<vmem>>, vector<1x256xf32>
    %c0_1 = arith.constant 0 : index
    %c0_2 = arith.constant 0 : index
    %1 = vector.load %arg2[%c0_1, %c0_2] : memref<256x32xf32, #tpu.memory_space<vmem>>, vector<256x32xf32>
    %cst = arith.constant dense<0.000000e+00> : vector<1x32xf32>
    %2 = tpu.matmul %0, %1, %cst {dimension_numbers = #tpu.dot_dimension_numbers<[1], [0], [0], [1], [0, 0, 1, 1], [], []>} : vector<1x256xf32>, vector<256x32xf32>, vector<1x32xf32> -> vector<1x32xf32>
    %c0_3 = arith.constant 0 : index
    %c0_4 = arith.constant 0 : index
    %3 = vector.load %arg3[%c0_3, %c0_4] : memref<1x32xf32, #tpu.memory_space<vmem>>, vector<1x32xf32>
    %4 = arith.addf %2, %3 : vector<1x32xf32>
    %cst_5 = arith.constant dense<0xFF800000> : vector<1xf32>
    %5 = vector.multi_reduction <maximumf>, %4, %cst_5 [1] : vector<1x32xf32> to vector<1xf32>
    %6 = vector.shape_cast %5 : vector<1xf32> to vector<1x1xf32>
    %7 = vector.broadcast %6 : vector<1x1xf32> to vector<1x32xf32>
    %8 = arith.subf %4, %7 : vector<1x32xf32>
    %9 = math.exp %8 : vector<1x32xf32>
    %c0_6 = arith.constant 0 : index
    %c0_7 = arith.constant 0 : index
    %10 = vector.load %arg4[%c0_6, %c0_7] : memref<32x32xf32, #tpu.memory_space<vmem>>, vector<32x32xf32>
    %cst_8 = arith.constant dense<0.000000e+00> : vector<1x32xf32>
    %11 = tpu.matmul %9, %10, %cst_8 {dimension_numbers = #tpu.dot_dimension_numbers<[1], [0], [0], [1], [0, 0, 1, 1], [], []>, precision = #tpu.contract_precision<fp32>} : vector<1x32xf32>, vector<32x32xf32>, vector<1x32xf32> -> vector<1x32xf32>
    %12 = arith.divf %9, %11 : vector<1x32xf32>
    %c0_9 = arith.constant 0 : index
    %c0_10 = arith.constant 0 : index
    %13 = vector.load %arg5[%c0_9, %c0_10] : memref<1x32xf32, #tpu.memory_space<vmem>>, vector<1x32xf32>
    tpu.vector_store %arg5[%c0_9, %c0_10], %12 {strides = array<i32>} : memref<1x32xf32, #tpu.memory_space<vmem>>, vector<1x32xf32>,
    return
  }
  func.func @transform_0(%arg0: i32) -> (i32, i32) {
    %c0_i32 = arith.constant 0 : i32
    %c0_i32_0 = arith.constant 0 : i32
    return %arg0, %c0_i32 : i32, i32
  }
  func.func @transform_1(%arg0: i32) -> (i32, i32) {
    %c0_i32 = arith.constant 0 : i32
    %c0_i32_0 = arith.constant 0 : i32
    %c0_i32_1 = arith.constant 0 : i32
    return %c0_i32, %c0_i32_0 : i32, i32
  }
  func.func @transform_2(%arg0: i32) -> (i32, i32) {
    %c0_i32 = arith.constant 0 : i32
    %c0_i32_0 = arith.constant 0 : i32
    %c0_i32_1 = arith.constant 0 : i32
    return %c0_i32, %c0_i32_0 : i32, i32
  }
  func.func @transform_3(%arg0: i32) -> (i32, i32) {
    %c0_i32 = arith.constant 0 : i32
    %c0_i32_0 = arith.constant 0 : i32
    %c0_i32_1 = arith.constant 0 : i32
    return %c0_i32, %c0_i32_0 : i32, i32
  }
  func.func @transform_4(%arg0: i32) -> (i32, i32) {
    %c0_i32 = arith.constant 0 : i32
    %c0_i32_0 = arith.constant 0 : i32
    return %arg0, %c0_i32 : i32, i32
  }
}

</mosaic_0001>

<bundles_post_ra>
// kernel: tpu_custom_call.1
= control target key start
LH: loop header
LB: loop body
LE: loop exit
PB: predicated region body
PF: predicated region fallthrough
CT: control target
= control target key end

     0   :  { %v53_v3 = vlaneseq  ;;  %s1065_s0 = inlined_call_operand.vmem [shape: f32[1,256], index: 0, kind: input, shape index: {}]   ;;  %s1066_s1 = inlined_call_operand.vmem [shape: f32[256,32], index: 1, kind: input, shape index: {}]   ;;  %s1067_s2 = inlined_call_operand.vmem [shape: f32[1,32], index: 2, kind: input, shape index: {}]   ;;  %s1068_s3 = inlined_call_operand.vmem [shape: f32[32,32], index: 3, kind: input, shape index: {}]   ;;  %s1069_s4 = inlined_call_operand.hbm [shape: f32[1,32], index: 4, kind: output, shape index: {}]  }
   0x1   :  { %v35_v0 = vld [vmem:[%s1066_s1 + $0x80] sm:$0xff]  ;;  %v36_v1 = vld [vmem:[%s1066_s1 + $0x88] sm:$0xff]  ;;  %v37_v6 = vld [vmem:[%s1066_s1 + $0x90] sm:$0xff] }
   0x2   :  { %v19_v2 = vld [vmem:[%s1066_s1] sm:$0xff]  ;;  %v781_v4 = vpack.c.bf16 %v36_v1, %v35_v0  ;;  %v20_v5 = vld [vmem:[%s1066_s1 + $0x8] sm:$0xff]  ;;  %v38_v7 = vld [vmem:[%s1066_s1 + $0x98] sm:$0xff]  ;;  %v54_v14 = vshrl.u32 %v53_v3, 7 }
   0x3   :  { %v783_v8 = vpack.c.bf16 %v20_v5, %v19_v2  ;;  %v785_v9 = vpack.c.bf16 %v38_v7, %v37_v6  ;;  %v21_v10 = vld [vmem:[%s1066_s1 + $0x10] sm:$0xff]  ;;  %v22_v11 = vld [vmem:[%s1066_s1 + $0x18] sm:$0xff]  ;;  %v39_v12 = vld [vmem:[%s1066_s1 + $0xa0] sm:$0xff] }
   0x4   :  { %782 = vmatprep.subr.bf16.mxu0 %v781_v4  ;;  %v40_v13 = vld [vmem:[%s1066_s1 + $0xa8] sm:$0xff]  ;;  %v787_v15 = vpack.c.bf16 %v22_v11, %v21_v10  ;;  %v23_v17 = vld [vmem:[%s1066_s1 + $0x20] sm:$0xff]  ;;  %v41_v19 = vld [vmem:[%s1066_s1 + $0xb0] sm:$0xff]  ;;  %v59_v21 = vsub.s32 1, %v54_v14 }
   0x5   :  { %784 = vmatpush3.bf16.msra.mxu0 %v783_v8  ;;  %v789_v16 = vpack.c.bf16 %v40_v13, %v39_v12  ;;  %v24_v18 = vld [vmem:[%s1066_s1 + $0x28] sm:$0xff]  ;;  %v42_v20 = vld [vmem:[%s1066_s1 + $0xb8] sm:$0xff]  ;;  %v25_v24 = vld [vmem:[%s1066_s1 + $0x30] sm:$0xff] }
   0x6   :  { %786 = vmatprep.subr.bf16.mxu0 %v785_v9  ;;  %v791_v22 = vpack.c.bf16 %v24_v18, %v23_v17  ;;  %v793_v23 = vpack.c.bf16 %v42_v20, %v41_v19  ;;  %v26_v25 = vld [vmem:[%s1066_s1 + $0x38] sm:$0xff]  ;;  %v43_v26 = vld [vmem:[%s1066_s1 + $0xc0] sm:$0xff]  ;;  %v44_v27 = vld [vmem:[%s1066_s1 + $0xc8] sm:$0xff] }
   0x7   :  { %v18_v28 = vld [vmem:[%s1065_s0] sm:$0x3] }
   0x8   :  { %v60_v29 = vrot.slane %v18_v28, %v59_v21 }
   0x9   :  { %788 = vmatpush3.bf16.msra.mxu0 %v787_v15 }
   0xa   :  { %790 = vmatprep.subr.bf16.mxu0 %v789_v16 }
   0xb   :  { %9 = vsyncpa [#allocation3], 0  ;;  %v795_v30 = vpack.c.bf16 %v26_v25, %v25_v24  ;;  %v797_v31 = vpack.c.bf16 %v44_v27, %v43_v26  ;;  %v27_v32 = vld [vmem:[%s1066_s1 + $0x40] sm:$0xff]  ;;  %v28_v33 = vld [vmem:[%s1066_s1 + $0x48] sm:$0xff]  ;;  %127 = vmatprep.mubr.f32.mxu0 %v60_v29  ;;  %v55_v52 = vsub.s32 0, %v54_v14  ;;  %vm133_vm0 = vcmask 253952  }
   0xc   :  { %v45_v34 = vld [vmem:[%s1066_s1 + $0xd0] sm:$0xff]  ;;  %v46_v35 = vld [vmem:[%s1066_s1 + $0xd8] sm:$0xff]  ;;  %v799_v36 = vpack.c.bf16 %v28_v33, %v27_v32  ;;  %v47_v40 = vld [vmem:[%s1066_s1 + $0xe0] sm:$0xff]  ;;  %v890_v9 = vmov 0.0|0.0   ;;  %vm891_vm1 = vmmov 0   ;;  %v892_v14 = vmov 0.0  }
   0xd   :  { %792 = vmatpush3.bf16.msra.mxu0 %v791_v22  ;;  %v801_v37 = vpack.c.bf16 %v46_v35, %v45_v34  ;;  %v29_v38 = vld [vmem:[%s1066_s1 + $0x50] sm:$0xff]  ;;  %v30_v39 = vld [vmem:[%s1066_s1 + $0x58] sm:$0xff]  ;;  %v48_v41 = vld [vmem:[%s1066_s1 + $0xe8] sm:$0xff]  ;;  %v56_v54 = vrot.slane %v18_v28, %v55_v52  ;;  %819 = vmatprep.subr.bf16.mxu1 %v890_v9  ;;  %vm144_vm2 = vcmask 261120  }
   0xe   :  { %794 = vmatprep.subr.bf16.mxu0 %v793_v23  ;;  %v803_v42 = vpack.c.bf16 %v30_v39, %v29_v38  ;;  %v805_v43 = vpack.c.bf16 %v48_v41, %v47_v40  ;;  %v31_v44 = vld [vmem:[%s1066_s1 + $0x60] sm:$0xff]  ;;  %v32_v45 = vld [vmem:[%s1066_s1 + $0x68] sm:$0xff]  ;;  %v49_v46 = vld [vmem:[%s1066_s1 + $0xf0] sm:$0xff]  ;;  %734 = vmatprep.mubr.msk.f32.mxu1 %vm891_vm1, %v892_v14 }
   0xf   :  { %v50_v47 = vld [vmem:[%s1066_s1 + $0xf8] sm:$0xff]  ;;  %v807_v48 = vpack.c.bf16 %v32_v45, %v31_v44  ;;  %v33_v50 = vld [vmem:[%s1066_s1 + $0x70] sm:$0xff]  ;;  %v51_v57 = vld [vmem:[%s1067_s2] sm:$0x1] }
  0x10   :  { %v809_v49 = vpack.c.bf16 %v50_v47, %v49_v46  ;;  %v34_v51 = vld [vmem:[%s1066_s1 + $0x78] sm:$0xff]  ;;  %v140_v61 = vld [vmem:[%s1068_s3] sm:$0xff]  ;;  %v141_v62 = vld [vmem:[%s1068_s3 + $0x8] sm:$0xff] }
  0x11   :  { %796 = vmatpush3.bf16.msra.mxu0 %v795_v30  ;;  %v811_v53 = vpack.c.bf16 %v34_v51, %v33_v50  ;;  %v149_v63 = vand.u32 4294901760, %v140_v61  ;;  %v152_v0 = vand.u32 4294901760, %v141_v62  ;;  %v142_v3 = vld [vmem:[%s1068_s3 + $0x10] sm:$0xff]  ;;  %v143_v4 = vld [vmem:[%s1068_s3 + $0x18] sm:$0xff]  ;;  %s893_s3 = smov [#allocation2]  }
  0x12   :  { %798 = vmatprep.subr.bf16.mxu0 %v797_v31  ;;  %v155_v7 = vand.u32 4294901760, %v142_v3  ;;  %v158_v8 = vand.u32 4294901760, %v143_v4  ;;  %s642_s9 = sshll.u32 %s893_s3, 4  ;;  %s643_s9 = int_to_ptr.vmem [resolvable:$true] %s642_s9 }
  0x13   :  { %v229_v1 = vsub.f32 %v140_v61, %v149_v63  ;;  %v236_v2 = vsub.f32 %v141_v62, %v152_v0  ;;  %v814_v26 = vpack.c.bf16 %v152_v0, %v149_v63  ;;  %s866_s10 = scalar_lea.vmem %s643_s9, 16  ;;  %s870_s11 = scalar_lea.vmem %s643_s9, 32 }
  0x14   :  { %v243_v12 = vsub.f32 %v142_v3, %v155_v7  ;;  %v250_v13 = vsub.f32 %v143_v4, %v158_v8  ;;  %v817_v28 = vpack.c.bf16 %v158_v8, %v155_v7  ;;  %p867_p0 = scmp.ne.s32.totalorder %s643_s9, %s866_s10  ;;  %p871_p1 = scmp.lt.s32.totalorder %s643_s9, %s643_s9 }
  0x15   :  { %800 = vmatpush3.bf16.msra.mxu0 %v799_v36  ;;  %v230_v5 = vand.u32 4294901760, %v229_v1  ;;  %v237_v6 = vand.u32 4294901760, %v236_v2  ;;  %v826_v25 = vpack.c.bf16 %v236_v2, %v229_v1  ;;  %p872_p2 = scmp.lt.s32.totalorder %s870_s11, %s866_s10 }
  0x16   :  { %802 = vmatprep.subr.bf16.mxu0 %v801_v37  ;;  %v244_v17 = vand.u32 4294901760, %v243_v12  ;;  %v251_v18 = vand.u32 4294901760, %v250_v13  ;;  %v829_v27 = vpack.c.bf16 %v250_v13, %v243_v12 }
  0x17   :  { %v231_v10 = vsub.f32 %v229_v1, %v230_v5  ;;  %v238_v11 = vsub.f32 %v236_v2, %v237_v6  ;;  %v838_v29 = vpack.c.bf16 %v237_v6, %v230_v5  ;;  %p873_p3 = por %p872_p2, %p871_p1 }
  0x18   :  { %v245_v20 = vsub.f32 %v243_v12, %v244_v17  ;;  %v252_v21 = vsub.f32 %v250_v13, %v251_v18  ;;  %v841_v30 = vpack.c.bf16 %v251_v18, %v244_v17 }
  0x19   :  { %804 = vmatpush3.bf16.msra.mxu0 %v803_v42  ;;  %v232_v15 = vand.u32 4294901760, %v231_v10  ;;  %v239_v16 = vand.u32 4294901760, %v238_v11  ;;  %p874_p4 = pnand %p873_p3, %p867_p0 }
  0x1a   :  { %806 = vmatprep.subr.bf16.mxu0 %v805_v43  ;;  %v246_v22 = vand.u32 4294901760, %v245_v20  ;;  %v253_v23 = vand.u32 4294901760, %v252_v21 }
  0x1b   :  { %v820_v19 = vpack.c.bf16 %v239_v16, %v232_v15 }
  0x1c   :  { %v823_v24 = vpack.c.bf16 %v253_v23, %v246_v22 }
  0x1d   :  { %808 = vmatpush3.bf16.msra.mxu0 %v807_v48  ;;  %821 = vmatpush3.bf16.msra.mxu1 %v820_v19 }
  0x1e   :  { %810 = vmatprep.subr.bf16.mxu0 %v809_v49  ;;  %822 = vmatprep.subr.bf16.mxu1 %v890_v9 }
  0x21   :  { %812 = vmatpush3.bf16.msra.mxu0 %v811_v53  ;;  %824 = vmatpush3.bf16.msra.mxu1 %v823_v24 }
  0x22   :  { %813 = vmatprep.subr.bf16.mxu0 %v890_v9  ;;  %825 = vmatprep.subr.bf16.mxu1 %v890_v9 }
  0x24   :  { %128 = vmatmul.mubr.f32.vlgmr.msra.gmra.mrb[0].mxu0 %v56_v54 }
  0x25   :  { %723 = vmatprep.mubr.msk.f32.mxu0 %vm891_vm1, %v892_v14  ;;  %815 = vmatpush3.bf16.msra.mxu0 %v814_v26 }
  0x26   :  { %816 = vmatprep.subr.bf16.mxu0 %v890_v9 }
  0x29   :  { %818 = vmatpush3.bf16.msra.mxu0 %v817_v28 }
  0xf7   :  { %v682_v55 = vpop.f32.mrb[0].mxu0 }
  0xf8   :  { %v683_v56 = vpop.f32.mrb[1].mxu0 }
  0xf9   :  { %v684_v58 = vadd.f32 %v683_v56, %v682_v55 }
  0xfb   :  { %v130_v59 = vadd.f32 %v684_v58, %v51_v57 }
  0xfd   :  { %v134_v60 = vsel %vm133_vm0, %v130_v59, -inf }
  0xfe   :  { %135 = vmax.xlane.f32.xlu0 %v134_v60 }
 0x18b   :  { %v136_v31 = vpop.xlane.xlu0 %135 }
 0x18c   :  { %v137_v32 = vsub.f32 %v130_v59, %v136_v31 }
 0x18e   :  { %v138_v33 = vmul.f32 1.442695, %v137_v32 }
 0x190   :  { %862 = vpow2.f32 %v138_v33 }
 0x19a   :  { %v863_v34 = vpop.eup %862 }
 0x19b   :  { %v146_v35 = vsel %vm144_vm2, %v863_v34, 0 }
 0x19c   :  { %v217_v36 = vand.u32 4294901760, %v146_v35 }
 0x19e   :  { %v218_v37 = vsub.f32 %v146_v35, %v217_v36  ;;  %735 = vmatmul.mubr.f32.vlgmr.msra.gmra.mrb[0].mxu1 %v217_v36 }
 0x19f   :  { %827 = vmatpush3.bf16.msra.mxu1 %v826_v25  ;;  %745 = vmatprep.mubr.msk.f32.mxu1 %vm891_vm1, %v892_v14 }
 0x1a0   :  { %828 = vmatprep.subr.bf16.mxu1 %v890_v9  ;;  %v219_v38 = vand.u32 4294901760, %v218_v37 }
 0x1a2   :  { %v220_v39 = vsub.f32 %v218_v37, %v219_v38 }
 0x1a3   :  { %830 = vmatpush3.bf16.msra.mxu1 %v829_v27 }
 0x1a4   :  { %831 = vmatprep.subr.bf16.mxu1 %v890_v9  ;;  %v221_v40 = vand.u32 4294901760, %v220_v39 }
 0x1a6   :  { %724 = vmatmul.mubr.f32.vlgmr.msra.gmra.mrb[2].mxu0 %v221_v40  ;;  %746 = vmatmul.mubr.f32.vlgmr.msra.gmra.mrb[0].mxu1 %v218_v37 }
 0x1a7   :  { %833 = vmatpush3.bf16.msra.mxu1 %v814_v26  ;;  %756 = vmatprep.mubr.msk.f32.mxu1 %vm891_vm1, %v892_v14 }
 0x1a8   :  { %834 = vmatprep.subr.bf16.mxu1 %v890_v9 }
 0x1ab   :  { %836 = vmatpush3.bf16.msra.mxu1 %v817_v28 }
 0x1ac   :  { %837 = vmatprep.subr.bf16.mxu1 %v890_v9 }
 0x1ae   :  { %757 = vmatmul.mubr.f32.vlgmr.msra.gmra.mrb[0].mxu1 %v219_v38 }
 0x1af   :  { %839 = vmatpush3.bf16.msra.mxu1 %v838_v29  ;;  %767 = vmatprep.mubr.msk.f32.mxu1 %vm891_vm1, %v892_v14 }
 0x1b0   :  { %840 = vmatprep.subr.bf16.mxu1 %v890_v9 }
 0x1b3   :  { %842 = vmatpush3.bf16.msra.mxu1 %v841_v30 }
 0x1b4   :  { %843 = vmatprep.subr.bf16.mxu1 %v890_v9 }
 0x1b6   :  { %768 = vmatmul.mubr.f32.vlgmr.msra.gmra.mrb[0].mxu1 %v217_v36 }
 0x1b7   :  { %845 = vmatpush3.bf16.msra.mxu1 %v814_v26  ;;  %778 = vmatprep.mubr.msk.f32.mxu1 %vm891_vm1, %v892_v14 }
 0x1b8   :  { %846 = vmatprep.subr.bf16.mxu1 %v890_v9 }
 0x1bb   :  { %848 = vmatpush3.bf16.msra.mxu1 %v817_v28 }
 0x1be   :  { %779 = vmatmul.mubr.f32.vlgmr.msra.gmra.mrb[0].mxu1 %v217_v36 }
 0x279   :  { %v223_v41 = vpop.f32.mrb[2].mxu0 }
 0x27a   :  { %v725_v42 = vpop.f32.mrb[3].mxu0 }
 0x291   :  { %v629_v43 = vpop.f32.mrb[0].mxu1 }
 0x292   :  { %v849_v44 = vadd.f32 %v629_v43, %v223_v41  ;;  %v780_v45 = vpop.f32.mrb[1].mxu1 }
 0x294   :  { %864 = vrcp.f32 %v849_v44 }
 0x29e   :  { %v865_v46 = vpop.eup %864 }
 0x29f   :  { %v634_v47 = vmul.f32 %v865_v46, %v863_v34 }
 0x2a1   :  { %635 = vst.msk [vmem:[#allocation2] sm:$0x1] %vm133_vm0, %v634_v47 }
 0x2a2   :  { %877 = shalt.err (!%p874_p4)
}
 0x2a3   :  { %s878_s14 = scalar_lea.hbm %s1069_s4, 16 }
 0x2a4   :  { %p879_p5 = scmp.ne.s32.totalorder %s1069_s4, %s878_s14  ;;  %p882_p6 = scmp.lt.u32.totalorder %s878_s14, %s1069_s4 }
 0x2a6   :  { %p884_p7 = pnand %p882_p6, %p879_p5 }
 0x2a8   :  { %887 = shalt.err (!%p884_p7)
}
 0x2a9   :  { %645 = dma.vmem_to_hbm [thread:$0]  %s643_s9, 16, %s1069_s4, [#allocation3]  }
 0x2aa   :  { %888 = dma.done.wait [#allocation3], 16  }
 0x2ab   :  { %889 = vsyncadd [#allocation3], 4294967280 }
 0x2ac   :  { %649 = vsyncpa [#allocation3], 1 }

</bundles_post_ra>
